<compile_context>
chip_gen: v7x
topology: tpu7x:2x2x1
jax: 0.10.0
libtpu: 0.0.40
codegen_flags: <defaults>
</compile_context>

<pallas_src>
import jax
import jax.numpy as jnp
from jax.experimental import pallas as pl
from jax.experimental.pallas import tpu as pltpu

NUM_ENC = 6
DIM_XYZ = 3 + 3 * 2 * NUM_ENC        # 39
DIM_DIR = 3 + 3 * 2 * NUM_ENC        # 39 (use_viewdirs=True)
IN_DIM = DIM_XYZ + DIM_DIR           # 78
HID = 128                            # filter_size
OUT_DIM = 4


def nerf_kernel(x_ref, w1_ref, b1_ref, w2_ref, b2_ref, w3_ref, b3_ref, out_ref):
    bf16 = jnp.bfloat16
    f32 = jnp.float32

    x = x_ref[...].astype(bf16)                                          # (T, 78)
    h = jnp.dot(x, w1_ref[...], preferred_element_type=f32) + b1_ref[...]
    h = jnp.maximum(h, 0.0)                                              # relu(layer1)
    h = jnp.dot(h.astype(bf16), w2_ref[...], preferred_element_type=f32) + b2_ref[...]
    h = jnp.maximum(h, 0.0)                                              # relu(layer2)
    out = jnp.dot(h.astype(bf16), w3_ref[...], preferred_element_type=f32) + b3_ref[...]
    out_ref[...] = out                                                   # (T, 4) f32


def make_params(key):
    """Deterministic synthetic weights. Stored (in, out); biases (1, out). f32."""
    dims = [
        ("w1", (IN_DIM, HID)), ("b1", (1, HID)),
        ("w2", (HID, HID)),    ("b2", (1, HID)),
        ("w3", (HID, OUT_DIM)), ("b3", (1, OUT_DIM)),
    ]
    params = {}
    for name, shape in dims:
        key, sub = jax.random.split(key)
        fan_in = shape[0] if name.startswith("w") else shape[1]
        params[name] = (jax.random.normal(sub, shape, jnp.float32)
                        * (1.0 / jnp.sqrt(jnp.float32(fan_in))))
    return params


def very_tiny_nerf(x, params, *, tile_n=4096):
    """x: (N, 78) float32. Returns (N, 4) float32."""
    N = x.shape[0]
    # Don't over-tile tiny inputs; keep the row tile a multiple of 128.
    tile_n = min(tile_n, pl.cdiv(N, 128) * 128)
    n_pad = pl.cdiv(N, tile_n) * tile_n
    if n_pad != N:
        x = jnp.pad(x, ((0, n_pad - N), (0, 0)))   # padded rows are harmless compute

    # bf16 matmul operands; f32 biases.
    w1 = params["w1"].astype(jnp.bfloat16)
    w2 = params["w2"].astype(jnp.bfloat16)
    w3 = params["w3"].astype(jnp.bfloat16)
    b1 = params["b1"]
    b2 = params["b2"]
    b3 = params["b3"]

    weights = [w1, b1, w2, b2, w3, b3]

    def weight_spec(arr):
        # Same block index every grid step -> fetched once, kept resident in VMEM.
        return pl.BlockSpec(arr.shape, lambda i: (0, 0))

    grid = (n_pad // tile_n,)

    flops = 2 * n_pad * (IN_DIM * HID + HID * HID + HID * OUT_DIM)
    bytes_accessed = (n_pad * IN_DIM * 4 + n_pad * OUT_DIM * 4
                      + sum(int(a.size) * a.dtype.itemsize for a in weights))
    cost = pl.CostEstimate(flops=flops, transcendentals=0,
                           bytes_accessed=bytes_accessed)

    grid_spec = pltpu.PrefetchScalarGridSpec(
        num_scalar_prefetch=0,
        grid=grid,
        in_specs=[pl.BlockSpec((tile_n, IN_DIM), lambda i: (i, 0))]
                 + [weight_spec(a) for a in weights],
        out_specs=pl.BlockSpec((tile_n, OUT_DIM), lambda i: (i, 0)),
    )

    out_padded = pl.pallas_call(
        nerf_kernel,
        out_shape=jax.ShapeDtypeStruct((n_pad, OUT_DIM), jnp.float32),
        grid_spec=grid_spec,
        compiler_params=pltpu.CompilerParams(
            dimension_semantics=("parallel",),
            vmem_limit_bytes=32 * 1024 * 1024),
        cost_estimate=cost,
    )(x, *weights)

    return out_padded[:N]


def reference_forward(x, params):
    """Pure-JAX reference mirroring the kernel numerics (bf16 operands, f32 accum)."""
    bf16 = jnp.bfloat16
    f32 = jnp.float32
    h = jnp.dot(x.astype(bf16), params["w1"].astype(bf16),
                preferred_element_type=f32) + params["b1"]
    h = jnp.maximum(h, 0.0)
    h = jnp.dot(h.astype(bf16), params["w2"].astype(bf16),
                preferred_element_type=f32) + params["b2"]
    h = jnp.maximum(h, 0.0)
    out = jnp.dot(h.astype(bf16), params["w3"].astype(bf16),
                  preferred_element_type=f32) + params["b3"]
    return out


if __name__ == "__main__":
    key = jax.random.PRNGKey(0)
    key, kx = jax.random.split(key)

    N = 200  # small test; not a multiple of 128 -> exercises the wrapper padding path
    x = jax.random.normal(kx, (N, IN_DIM), jnp.float32)
    params = make_params(key)

    out = very_tiny_nerf(x, params)
    out = jax.block_until_ready(out)

    ref = reference_forward(x, params)
    assert out.shape == (N, OUT_DIM)
    assert jnp.allclose(out, ref, atol=1e-2, rtol=1e-2), "mismatch vs reference"
    print("KERNEL_OK")
</pallas_src>

<mosaic_0001>
module attributes {stable_mosaic.version = 11 : i64} {
  func.func @nerf_kernel(%arg0: i32, %arg1: memref<256x78xf32, #tpu.memory_space<vmem>>, %arg2: memref<78x128xbf16, #tpu.memory_space<vmem>>, %arg3: memref<1x128xf32, #tpu.memory_space<vmem>>, %arg4: memref<128x128xbf16, #tpu.memory_space<vmem>>, %arg5: memref<1x128xf32, #tpu.memory_space<vmem>>, %arg6: memref<128x4xbf16, #tpu.memory_space<vmem>>, %arg7: memref<1x4xf32, #tpu.memory_space<vmem>>, %arg8: memref<256x4xf32, #tpu.memory_space<vmem>>) attributes {dimension_semantics = [#tpu.dimension_semantics<parallel>], iteration_bounds = array<i64: 1>, scalar_prefetch = 0 : i64, scratch_operands = 0 : i64, tpu.core_type = #tpu.core_type<tc>, window_params = [{transform_indices = @transform_0, window_bounds = array<i64: 256, 78>}, {pipeline_mode = #tpu.pipeline_mode<synchronous>, transform_indices = @transform_1, window_bounds = array<i64: 78, 128>}, {pipeline_mode = #tpu.pipeline_mode<synchronous>, transform_indices = @transform_2, window_bounds = array<i64: 1, 128>}, {pipeline_mode = #tpu.pipeline_mode<synchronous>, transform_indices = @transform_3, window_bounds = array<i64: 128, 128>}, {pipeline_mode = #tpu.pipeline_mode<synchronous>, transform_indices = @transform_4, window_bounds = array<i64: 1, 128>}, {pipeline_mode = #tpu.pipeline_mode<synchronous>, transform_indices = @transform_5, window_bounds = array<i64: 128, 4>}, {pipeline_mode = #tpu.pipeline_mode<synchronous>, transform_indices = @transform_6, window_bounds = array<i64: 1, 4>}, {transform_indices = @transform_7, window_bounds = array<i64: 256, 4>}]} {
    %c0 = arith.constant 0 : index
    %c0_0 = arith.constant 0 : index
    %0 = vector.load %arg1[%c0, %c0_0] : memref<256x78xf32, #tpu.memory_space<vmem>>, vector<256x78xf32>
    %1 = arith.truncf %0 : vector<256x78xf32> to vector<256x78xbf16>
    %c0_1 = arith.constant 0 : index
    %c0_2 = arith.constant 0 : index
    %2 = vector.load %arg2[%c0_1, %c0_2] : memref<78x128xbf16, #tpu.memory_space<vmem>>, vector<78x128xbf16>
    %cst = arith.constant dense<0.000000e+00> : vector<256x128xf32>
    %3 = tpu.matmul %1, %2, %cst {dimension_numbers = #tpu.dot_dimension_numbers<[1], [0], [0], [1], [0, 0, 1, 1], [], []>} : vector<256x78xbf16>, vector<78x128xbf16>, vector<256x128xf32> -> vector<256x128xf32>
    %c0_3 = arith.constant 0 : index
    %c0_4 = arith.constant 0 : index
    %4 = vector.load %arg3[%c0_3, %c0_4] : memref<1x128xf32, #tpu.memory_space<vmem>>, vector<1x128xf32>
    %5 = vector.broadcast %4 : vector<1x128xf32> to vector<256x128xf32>
    %6 = arith.addf %3, %5 : vector<256x128xf32>
    %cst_5 = arith.constant 0.000000e+00 : f32
    %7 = vector.broadcast %cst_5 : f32 to vector<256x128xf32>
    %8 = arith.maximumf %6, %7 : vector<256x128xf32>
    %9 = arith.truncf %8 : vector<256x128xf32> to vector<256x128xbf16>
    %c0_6 = arith.constant 0 : index
    %c0_7 = arith.constant 0 : index
    %10 = vector.load %arg4[%c0_6, %c0_7] : memref<128x128xbf16, #tpu.memory_space<vmem>>, vector<128x128xbf16>
    %cst_8 = arith.constant dense<0.000000e+00> : vector<256x128xf32>
    %11 = tpu.matmul %9, %10, %cst_8 {dimension_numbers = #tpu.dot_dimension_numbers<[1], [0], [0], [1], [0, 0, 1, 1], [], []>} : vector<256x128xbf16>, vector<128x128xbf16>, vector<256x128xf32> -> vector<256x128xf32>
    %c0_9 = arith.constant 0 : index
    %c0_10 = arith.constant 0 : index
    %12 = vector.load %arg5[%c0_9, %c0_10] : memref<1x128xf32, #tpu.memory_space<vmem>>, vector<1x128xf32>
    %13 = vector.broadcast %12 : vector<1x128xf32> to vector<256x128xf32>
    %14 = arith.addf %11, %13 : vector<256x128xf32>
    %cst_11 = arith.constant 0.000000e+00 : f32
    %15 = vector.broadcast %cst_11 : f32 to vector<256x128xf32>
    %16 = arith.maximumf %14, %15 : vector<256x128xf32>
    %17 = arith.truncf %16 : vector<256x128xf32> to vector<256x128xbf16>
    %c0_12 = arith.constant 0 : index
    %c0_13 = arith.constant 0 : index
    %18 = vector.load %arg6[%c0_12, %c0_13] : memref<128x4xbf16, #tpu.memory_space<vmem>>, vector<128x4xbf16>
    %cst_14 = arith.constant dense<0.000000e+00> : vector<256x4xf32>
    %19 = tpu.matmul %17, %18, %cst_14 {dimension_numbers = #tpu.dot_dimension_numbers<[1], [0], [0], [1], [0, 0, 1, 1], [], []>} : vector<256x128xbf16>, vector<128x4xbf16>, vector<256x4xf32> -> vector<256x4xf32>
    %c0_15 = arith.constant 0 : index
    %c0_16 = arith.constant 0 : index
    %20 = vector.load %arg7[%c0_15, %c0_16] : memref<1x4xf32, #tpu.memory_space<vmem>>, vector<1x4xf32>
    %21 = vector.broadcast %20 : vector<1x4xf32> to vector<256x4xf32>
    %22 = arith.addf %19, %21 : vector<256x4xf32>
    %c0_17 = arith.constant 0 : index
    %c0_18 = arith.constant 0 : index
    %23 = vector.load %arg8[%c0_17, %c0_18] : memref<256x4xf32, #tpu.memory_space<vmem>>, vector<256x4xf32>
    tpu.vector_store %arg8[%c0_17, %c0_18], %22 {strides = array<i32>} : memref<256x4xf32, #tpu.memory_space<vmem>>, vector<256x4xf32>,
    return
  }
  func.func @transform_0(%arg0: i32) -> (i32, i32) {
    %c0_i32 = arith.constant 0 : i32
    %c0_i32_0 = arith.constant 0 : i32
    return %arg0, %c0_i32 : i32, i32
  }
  func.func @transform_1(%arg0: i32) -> (i32, i32) {
    %c0_i32 = arith.constant 0 : i32
    %c0_i32_0 = arith.constant 0 : i32
    %c0_i32_1 = arith.constant 0 : i32
    return %c0_i32, %c0_i32_0 : i32, i32
  }
  func.func @transform_2(%arg0: i32) -> (i32, i32) {
    %c0_i32 = arith.constant 0 : i32
    %c0_i32_0 = arith.constant 0 : i32
    %c0_i32_1 = arith.constant 0 : i32
    return %c0_i32, %c0_i32_0 : i32, i32
  }
  func.func @transform_3(%arg0: i32) -> (i32, i32) {
    %c0_i32 = arith.constant 0 : i32
    %c0_i32_0 = arith.constant 0 : i32
    %c0_i32_1 = arith.constant 0 : i32
    return %c0_i32, %c0_i32_0 : i32, i32
  }
  func.func @transform_4(%arg0: i32) -> (i32, i32) {
    %c0_i32 = arith.constant 0 : i32
    %c0_i32_0 = arith.constant 0 : i32
    %c0_i32_1 = arith.constant 0 : i32
    return %c0_i32, %c0_i32_0 : i32, i32
  }
  func.func @transform_5(%arg0: i32) -> (i32, i32) {
    %c0_i32 = arith.constant 0 : i32
    %c0_i32_0 = arith.constant 0 : i32
    %c0_i32_1 = arith.constant 0 : i32
    return %c0_i32, %c0_i32_0 : i32, i32
  }
  func.func @transform_6(%arg0: i32) -> (i32, i32) {
    %c0_i32 = arith.constant 0 : i32
    %c0_i32_0 = arith.constant 0 : i32
    %c0_i32_1 = arith.constant 0 : i32
    return %c0_i32, %c0_i32_0 : i32, i32
  }
  func.func @transform_7(%arg0: i32) -> (i32, i32) {
    %c0_i32 = arith.constant 0 : i32
    %c0_i32_0 = arith.constant 0 : i32
    return %arg0, %c0_i32 : i32, i32
  }
}

</mosaic_0001>

<bundles_post_ra>
// kernel: tpu_custom_call.1
= control target key start
LH: loop header
LB: loop body
LE: loop exit
PB: predicated region body
PF: predicated region fallthrough
CT: control target
= control target key end

     0   :  { %vm121_vm0 = vcmask 637952   ;;  %vm170_vm1 = vcmask 1046528   ;;  %vm895_vm2 = vcmask 31744   ;;  %s1678_s1 = inlined_call_operand.vmem [shape: bf16[78,128], index: 1, kind: input, shape index: {}]   ;;  %s1679_s0 = inlined_call_operand.vmem [shape: f32[256,78], index: 0, kind: input, shape index: {}]   ;;  %s1680_s3 = inlined_call_operand.vmem [shape: bf16[128,128], index: 3, kind: input, shape index: {}]   ;;  %s1681_s5 = inlined_call_operand.vmem [shape: bf16[128,4], index: 5, kind: input, shape index: {}]   ;;  %s1682_s2 = inlined_call_operand.vmem [shape: f32[1,128], index: 2, kind: input, shape index: {}]   ;;  %s1683_s4 = inlined_call_operand.vmem [shape: f32[1,128], index: 4, kind: input, shape index: {}]   ;;  %s1684_s6 = inlined_call_operand.vmem [shape: f32[1,4], index: 6, kind: input, shape index: {}]   ;;  %s1685_s7 = inlined_call_operand.vmem [shape: f32[256,4], index: 7, kind: output, shape index: {}]  }
   0x1   :  { %v1191_v0 = vld [vmem:[%s1678_s1] sm:$0xff]   ;;  %v1192_v1 = vld [vmem:[%s1678_s1 + $0x8] sm:$0xff]   ;;  %v1193_v2 = vld [vmem:[%s1678_s1 + $0x10] sm:$0xff]  }
   0x2   :  { %1041 = vmatprep.subr.bf16.mxu0 %v1191_v0  ;;  %1179 = vmatprep.subr.bf16.mxu1 %v1191_v0  ;;  %v27_v3 = vld [vmem:[%s1679_s0] sm:$0xff]  ;;  %v28_v4 = vld [vmem:[%s1679_s0 + $0x8] sm:$0xff]  ;;  %v1194_v6 = vld [vmem:[%s1678_s1 + $0x18] sm:$0xff]  }
   0x3   :  { %1042 = vmatpush3.bf16.msra.mxu0 %v1191_v0  ;;  %1184 = vmatpush3.bf16.msra.mxu1 %v1191_v0  ;;  %v59_v5 = vpack.c.bf16 %v28_v4, %v27_v3  ;;  %v43_v7 = vld [vmem:[%s1679_s0 + $0x80] sm:$0xff]  ;;  %v44_v8 = vld [vmem:[%s1679_s0 + $0x88] sm:$0xff]  ;;  %v29_v11 = vld [vmem:[%s1679_s0 + $0x10] sm:$0xff] }
   0x4   :  { %1043 = vmatprep.subr.bf16.mxu0 %v1192_v1  ;;  %1180 = vmatprep.subr.bf16.mxu1 %v1192_v1  ;;  %v67_v9 = vpack.c.bf16 %v44_v8, %v43_v7  ;;  %v1195_v10 = vld [vmem:[%s1678_s1 + $0x20] sm:$0x7f]   ;;  %v30_v12 = vld [vmem:[%s1679_s0 + $0x18] sm:$0xff]  ;;  %v32_v14 = vld [vmem:[%s1679_s0 + $0x28] sm:$0xff] }
   0x5   :  { %1051 = vmatprep.mubr.msk.bf16.mxu0 %vm121_vm0, %v59_v5  ;;  %v31_v13 = vld [vmem:[%s1679_s0 + $0x20] sm:$0xff]  ;;  %v45_v15 = vld [vmem:[%s1679_s0 + $0x90] sm:$0xff]  ;;  %v46_v16 = vld [vmem:[%s1679_s0 + $0x98] sm:$0xff]  ;;  %v172_v19 = vsel %vm170_vm1, %v1195_v10, 0  ;;  %v60_v21 = vpack.c.bf16 %v30_v12, %v29_v11 }
   0x6   :  { %1067 = vmatprep.mubr.msk.bf16.mxu1 %vm121_vm0, %v67_v9  ;;  %v47_v17 = vld [vmem:[%s1679_s0 + $0xa0] sm:$0xff]  ;;  %v48_v18 = vld [vmem:[%s1679_s0 + $0xa8] sm:$0xff]  ;;  %v68_v22 = vpack.c.bf16 %v46_v16, %v45_v15  ;;  %v61_v23 = vpack.c.bf16 %v32_v14, %v31_v13  ;;  %v33_v25 = vld [vmem:[%s1679_s0 + $0x30] sm:$0xff] }
   0x7   :  { %1044 = vmatpush3.bf16.msra.mxu0 %v1192_v1  ;;  %1185 = vmatpush3.bf16.msra.mxu1 %v1192_v1  ;;  %v1196_v20 = vld [vmem:[%s1680_s3] sm:$0xff]   ;;  %v69_v24 = vpack.c.bf16 %v48_v18, %v47_v17  ;;  %v34_v26 = vld [vmem:[%s1679_s0 + $0x38] sm:$0xff]  ;;  %v1197_v27 = vld [vmem:[%s1680_s3 + $0x8] sm:$0xff]  }
   0x8   :  { %1045 = vmatprep.subr.bf16.mxu0 %v1193_v2  ;;  %1181 = vmatprep.subr.bf16.mxu1 %v1193_v2  ;;  %v35_v28 = vld [vmem:[%s1679_s0 + $0x40] sm:$0xff]  ;;  %v49_v29 = vld [vmem:[%s1679_s0 + $0xb0] sm:$0xff]  ;;  %v50_v30 = vld [vmem:[%s1679_s0 + $0xb8] sm:$0xff]  ;;  %v62_v35 = vpack.c.bf16 %v34_v26, %v33_v25 }
   0x9   :  { %v36_v31 = vld [vmem:[%s1679_s0 + $0x48] sm:$0xff]  ;;  %v51_v32 = vld [vmem:[%s1679_s0 + $0xc0] sm:$0xff]  ;;  %v1198_v34 = vld [vmem:[%s1680_s3 + $0x10] sm:$0xff]   ;;  %v70_v36 = vpack.c.bf16 %v50_v30, %v49_v29 }
   0xa   :  { %v52_v33 = vld [vmem:[%s1679_s0 + $0xc8] sm:$0xff]  ;;  %v63_v37 = vpack.c.bf16 %v36_v31, %v35_v28  ;;  %v1199_v39 = vld [vmem:[%s1680_s3 + $0x18] sm:$0xff]   ;;  %v37_v40 = vld [vmem:[%s1679_s0 + $0x50] sm:$0xff] }
   0xb   :  { %1046 = vmatpush3.bf16.msra.mxu0 %v1193_v2  ;;  %1186 = vmatpush3.bf16.msra.mxu1 %v1193_v2  ;;  %v71_v38 = vpack.c.bf16 %v52_v33, %v51_v32  ;;  %v38_v41 = vld [vmem:[%s1679_s0 + $0x58] sm:$0xff]  ;;  %v39_v42 = vld [vmem:[%s1679_s0 + $0x60] sm:$0xff]  ;;  %v53_v43 = vld [vmem:[%s1679_s0 + $0xd0] sm:$0xff] }
   0xc   :  { %1047 = vmatprep.subr.bf16.mxu0 %v1194_v6  ;;  %1182 = vmatprep.subr.bf16.mxu1 %v1194_v6  ;;  %v54_v44 = vld [vmem:[%s1679_s0 + $0xd8] sm:$0xff]  ;;  %v40_v45 = vld [vmem:[%s1679_s0 + $0x68] sm:$0xff]  ;;  %v55_v46 = vld [vmem:[%s1679_s0 + $0xe0] sm:$0xff]  ;;  %v64_v49 = vpack.c.bf16 %v38_v41, %v37_v40 }
   0xd   :  { %v56_v47 = vld [vmem:[%s1679_s0 + $0xe8] sm:$0xff]  ;;  %v1200_v48 = vld [vmem:[%s1680_s3 + $0x20] sm:$0xff]   ;;  %v72_v50 = vpack.c.bf16 %v54_v44, %v53_v43  ;;  %v65_v51 = vpack.c.bf16 %v40_v45, %v39_v42  ;;  %v41_v54 = vld [vmem:[%s1679_s0 + $0x70] sm:$0xff] }
   0xe   :  { %v73_v52 = vpack.c.bf16 %v56_v47, %v55_v46  ;;  %v1201_v53 = vld [vmem:[%s1680_s3 + $0x28] sm:$0xff]   ;;  %v42_v55 = vld [vmem:[%s1679_s0 + $0x78] sm:$0xff]  ;;  %v57_v56 = vld [vmem:[%s1679_s0 + $0xf0] sm:$0xff] }
   0xf   :  { %1048 = vmatpush3.bf16.msra.mxu0 %v1194_v6  ;;  %1187 = vmatpush3.bf16.msra.mxu1 %v1194_v6  ;;  %v58_v57 = vld [vmem:[%s1679_s0 + $0xf8] sm:$0xff]  ;;  %v66_v58 = vpack.c.bf16 %v42_v55, %v41_v54  ;;  %v1202_v60 = vld [vmem:[%s1680_s3 + $0x30] sm:$0xff]   ;;  %v1204_v62 = vld [vmem:[%s1681_s5] sm:$0xff]  }
  0x10   :  { %1189 = vmatprep.subr.msk.bf16.mxu0 %vm170_vm1, %v1195_v10  ;;  %1190 = vmatprep.subr.msk.bf16.mxu1 %vm170_vm1, %v1195_v10  ;;  %v74_v59 = vpack.c.bf16 %v58_v57, %v57_v56  ;;  %v1203_v61 = vld [vmem:[%s1680_s3 + $0x38] sm:$0xff]   ;;  %v1205_v63 = vld [vmem:[%s1681_s5 + $0x8] sm:$0xff]   ;;  %v1206_v0 = vld [vmem:[%s1681_s5 + $0x10] sm:$0xff]  }
  0x11   :  { %v1207_v1 = vld [vmem:[%s1681_s5 + $0x18] sm:$0xff]   ;;  %v1208_v2 = vld [vmem:[%s1681_s5 + $0x20] sm:$0xff]   ;;  %v1209_v3 = vld [vmem:[%s1681_s5 + $0x28] sm:$0xff]  }
  0x12   :  { %v1424_v4 = vld [vmem:[%s1682_s2] ss:$0 sm:$0xff] }
  0x13   :  { %1050 = vmatpush3.bf16.msra.mxu0 %v172_v19  ;;  %1188 = vmatpush3.bf16.msra.mxu1 %v172_v19 }
  0x14   :  { %1083 = vmatprep.subr.bf16.mxu1 %v1196_v20  ;;  %1131 = vmatprep.subr.bf16.mxu0 %v1204_v62 }
  0x16   :  { %1052 = vmatmul.mubr.msk.bf16.vlgmr.msra.gmra.mrb[0].mxu0 %vm121_vm0, %v60_v21  ;;  %1068 = vmatmul.mubr.msk.bf16.vlgmr.msra.gmra.mrb[0].mxu1 %vm121_vm0, %v68_v22 }
  0x17   :  { %1055 = vmatprep.mubr.msk.bf16.mxu0 %vm121_vm0, %v61_v23  ;;  %1071 = vmatprep.mubr.msk.bf16.mxu1 %vm121_vm0, %v69_v24 }
  0x18   :  { %1084 = vmatpush3.bf16.msra.mxu1 %v1196_v20  ;;  %1132 = vmatpush3.bf16.msra.mxu0 %v1204_v62 }
  0x19   :  { %1085 = vmatprep.subr.bf16.mxu1 %v1197_v27  ;;  %1133 = vmatprep.subr.bf16.mxu0 %v1205_v63 }
  0x1c   :  { %1086 = vmatpush3.bf16.msra.mxu1 %v1197_v27  ;;  %1134 = vmatpush3.bf16.msra.mxu0 %v1205_v63 }
  0x1d   :  { %1087 = vmatprep.subr.bf16.mxu1 %v1198_v34  ;;  %1135 = vmatprep.subr.bf16.mxu0 %v1206_v0 }
  0x1e   :  { %1056 = vmatmul.mubr.msk.bf16.gmra.mrb[4].mxu0 %vm121_vm0, %v62_v35  ;;  %1072 = vmatmul.mubr.msk.bf16.gmra.mrb[4].mxu1 %vm121_vm0, %v70_v36 }
  0x1f   :  { %1059 = vmatprep.mubr.msk.bf16.mxu0 %vm121_vm0, %v63_v37  ;;  %1075 = vmatprep.mubr.msk.bf16.mxu1 %vm121_vm0, %v71_v38 }
  0x20   :  { %1088 = vmatpush3.bf16.msra.mxu1 %v1198_v34  ;;  %1136 = vmatpush3.bf16.msra.mxu0 %v1206_v0 }
  0x21   :  { %1089 = vmatprep.subr.bf16.mxu1 %v1199_v39  ;;  %1137 = vmatprep.subr.bf16.mxu0 %v1207_v1 }
  0x24   :  { %1090 = vmatpush3.bf16.msra.mxu1 %v1199_v39  ;;  %1138 = vmatpush3.bf16.msra.mxu0 %v1207_v1 }
  0x25   :  { %1091 = vmatprep.subr.bf16.mxu1 %v1200_v48  ;;  %1139 = vmatprep.subr.bf16.mxu0 %v1208_v2 }
  0x26   :  { %1060 = vmatmul.mubr.msk.bf16.gmra.mrb[8].mxu0 %vm121_vm0, %v64_v49  ;;  %1076 = vmatmul.mubr.msk.bf16.gmra.mrb[8].mxu1 %vm121_vm0, %v72_v50 }
  0x27   :  { %1063 = vmatprep.mubr.msk.bf16.mxu0 %vm121_vm0, %v65_v51  ;;  %1079 = vmatprep.mubr.msk.bf16.mxu1 %vm121_vm0, %v73_v52 }
  0x28   :  { %1092 = vmatpush3.bf16.msra.mxu1 %v1200_v48  ;;  %1140 = vmatpush3.bf16.msra.mxu0 %v1208_v2 }
  0x29   :  { %1093 = vmatprep.subr.bf16.mxu1 %v1201_v53  ;;  %1141 = vmatprep.subr.bf16.mxu0 %v1209_v3 }
  0x2c   :  { %1094 = vmatpush3.bf16.msra.mxu1 %v1201_v53  ;;  %1142 = vmatpush3.bf16.msra.mxu0 %v1209_v3 }
  0x2d   :  { %1095 = vmatprep.subr.bf16.mxu1 %v1202_v60 }
  0x2e   :  { %1064 = vmatmul.mubr.msk.bf16.gmra.mrb[12].mxu0 %vm121_vm0, %v66_v58  ;;  %1080 = vmatmul.mubr.msk.bf16.gmra.mrb[12].mxu1 %vm121_vm0, %v74_v59 }
  0x30   :  { %1096 = vmatpush3.bf16.msra.mxu1 %v1202_v60 }
  0x31   :  { %1097 = vmatprep.subr.bf16.mxu1 %v1203_v61 }
  0x34   :  { %1098 = vmatpush3.bf16.msra.mxu1 %v1203_v61 }
  0xe9   :  { %v1053_v5 = vpop.f32.mrb[0].mxu0  ;;  %v1069_v6 = vpop.f32.mrb[0].mxu1 }
  0xea   :  { %v217_v7 = vadd.f32 %v1053_v5, %v1424_v4  ;;  %v208_v8 = vpop.f32.mrb[1].mxu0  ;;  %v281_v9 = vadd.f32 %v1069_v6, %v1424_v4  ;;  %v272_v10 = vpop.f32.mrb[1].mxu1 }
  0xeb   :  { %v209_v11 = vadd.f32 %v1424_v4, %v208_v8  ;;  %v1054_v12 = vpop.f32.mrb[2].mxu0  ;;  %v273_v13 = vadd.f32 %v1424_v4, %v272_v10  ;;  %v1070_v14 = vpop.f32.mrb[2].mxu1 }
  0xec   :  { %v220_v15 = vadd.f32 %v1054_v12, %v1424_v4  ;;  %v211_v16 = vpop.f32.mrb[3].mxu0  ;;  %v353_v17 = vmax.f32 %v281_v9, 0.0  ;;  %v284_v18 = vadd.f32 %v1070_v14, %v1424_v4  ;;  %v275_v19 = vpop.f32.mrb[3].mxu1  ;;  %v337_v23 = vmax.f32 %v217_v7, 0.0 }
  0xed   :  { %v212_v20 = vadd.f32 %v1424_v4, %v211_v16  ;;  %v351_v21 = vmax.f32 %v273_v13, 0.0  ;;  %v276_v22 = vadd.f32 %v1424_v4, %v275_v19  ;;  %v335_v26 = vmax.f32 %v209_v11, 0.0 }
  0xee   :  { %v338_v24 = vmax.f32 %v220_v15, 0.0  ;;  %v354_v25 = vmax.f32 %v284_v18, 0.0 }
  0xef   :  { %v336_v27 = vmax.f32 %v212_v20, 0.0  ;;  %v352_v28 = vmax.f32 %v276_v22, 0.0 }
  0xf0   :  { %v368_v29 = vpack.c.bf16 %v338_v24, %v337_v23  ;;  %v1434_v30 = vpack.c.bf16 %v354_v25, %v353_v17 }
  0xf1   :  { %v367_v31 = vpack.c.bf16 %v336_v27, %v335_v26  ;;  %v1057_v32 = vpop.f32.mrb[4].mxu0  ;;  %v1436_v33 = vpack.c.bf16 %v352_v28, %v351_v21  ;;  %v1073_v34 = vpop.f32.mrb[4].mxu1 }
  0xf2   :  { %v233_v35 = vadd.f32 %v1057_v32, %v1424_v4  ;;  %v224_v36 = vpop.f32.mrb[5].mxu0  ;;  %v297_v37 = vadd.f32 %v1073_v34, %v1424_v4  ;;  %v288_v38 = vpop.f32.mrb[5].mxu1 }
  0xf3   :  { %v225_v39 = vadd.f32 %v1424_v4, %v224_v36  ;;  %v1058_v40 = vpop.f32.mrb[6].mxu0  ;;  %1099 = vmatprep.mubr.bf16.mxu1 %v367_v31  ;;  %v289_v41 = vadd.f32 %v1424_v4, %v288_v38  ;;  %v1074_v42 = vpop.f32.mrb[6].mxu1 }
  0xf4   :  { %v236_v43 = vadd.f32 %v1058_v40, %v1424_v4  ;;  %v227_v44 = vpop.f32.mrb[7].mxu0  ;;  %1100 = vmatmul.mubr.bf16.vlgmr.msra.gmra.mrb[16].mxu1 %v368_v29  ;;  %v357_v45 = vmax.f32 %v297_v37, 0.0  ;;  %v300_v46 = vadd.f32 %v1074_v42, %v1424_v4  ;;  %v291_v47 = vpop.f32.mrb[7].mxu1  ;;  %v341_v51 = vmax.f32 %v233_v35, 0.0 }
  0xf5   :  { %v228_v48 = vadd.f32 %v1424_v4, %v227_v44  ;;  %v355_v49 = vmax.f32 %v289_v41, 0.0  ;;  %v292_v50 = vadd.f32 %v1424_v4, %v291_v47  ;;  %v339_v54 = vmax.f32 %v225_v39, 0.0 }
  0xf6   :  { %v342_v52 = vmax.f32 %v236_v43, 0.0  ;;  %v358_v53 = vmax.f32 %v300_v46, 0.0 }
  0xf7   :  { %v340_v55 = vmax.f32 %v228_v48, 0.0  ;;  %v356_v56 = vmax.f32 %v292_v50, 0.0 }
  0xf8   :  { %v370_v57 = vpack.c.bf16 %v342_v52, %v341_v51  ;;  %v1446_v58 = vpack.c.bf16 %v358_v53, %v357_v45 }
  0xf9   :  { %v369_v59 = vpack.c.bf16 %v340_v55, %v339_v54  ;;  %v1061_v60 = vpop.f32.mrb[8].mxu0  ;;  %v1448_v61 = vpack.c.bf16 %v356_v56, %v355_v49  ;;  %v1077_v62 = vpop.f32.mrb[8].mxu1 }
  0xfa   :  { %v249_v63 = vadd.f32 %v1061_v60, %v1424_v4  ;;  %v240_v0 = vpop.f32.mrb[9].mxu0  ;;  %v313_v1 = vadd.f32 %v1077_v62, %v1424_v4  ;;  %v304_v2 = vpop.f32.mrb[9].mxu1 }
  0xfb   :  { %v241_v3 = vadd.f32 %v1424_v4, %v240_v0  ;;  %v1062_v5 = vpop.f32.mrb[10].mxu0  ;;  %1103 = vmatprep.mubr.bf16.mxu1 %v369_v59  ;;  %v305_v6 = vadd.f32 %v1424_v4, %v304_v2  ;;  %v1078_v7 = vpop.f32.mrb[10].mxu1 }
  0xfc   :  { %v252_v8 = vadd.f32 %v1062_v5, %v1424_v4  ;;  %v243_v9 = vpop.f32.mrb[11].mxu0  ;;  %1104 = vmatmul.mubr.bf16.gmra.mrb[20].mxu1 %v370_v57  ;;  %v361_v10 = vmax.f32 %v313_v1, 0.0  ;;  %v316_v11 = vadd.f32 %v1078_v7, %v1424_v4  ;;  %v307_v12 = vpop.f32.mrb[11].mxu1  ;;  %v345_v16 = vmax.f32 %v249_v63, 0.0 }
  0xfd   :  { %v244_v13 = vadd.f32 %v1424_v4, %v243_v9  ;;  %v359_v14 = vmax.f32 %v305_v6, 0.0  ;;  %v308_v15 = vadd.f32 %v1424_v4, %v307_v12  ;;  %v343_v19 = vmax.f32 %v241_v3, 0.0 }
  0xfe   :  { %v346_v17 = vmax.f32 %v252_v8, 0.0  ;;  %v362_v18 = vmax.f32 %v316_v11, 0.0 }
  0xff   :  { %v344_v20 = vmax.f32 %v244_v13, 0.0  ;;  %v360_v21 = vmax.f32 %v308_v15, 0.0 }
 0x100   :  { %v372_v22 = vpack.c.bf16 %v346_v17, %v345_v16  ;;  %v380_v23 = vpack.c.bf16 %v362_v18, %v361_v10 }
 0x101   :  { %v371_v24 = vpack.c.bf16 %v344_v20, %v343_v19  ;;  %v1065_v25 = vpop.f32.mrb[12].mxu0  ;;  %v379_v26 = vpack.c.bf16 %v360_v21, %v359_v14  ;;  %v1081_v27 = vpop.f32.mrb[12].mxu1 }
 0x102   :  { %v265_v28 = vadd.f32 %v1065_v25, %v1424_v4  ;;  %v256_v29 = vpop.f32.mrb[13].mxu0  ;;  %v329_v31 = vadd.f32 %v1081_v27, %v1424_v4  ;;  %v320_v32 = vpop.f32.mrb[13].mxu1 }
 0x103   :  { %v257_v34 = vadd.f32 %v1424_v4, %v256_v29  ;;  %v1066_v35 = vpop.f32.mrb[14].mxu0  ;;  %1107 = vmatprep.mubr.bf16.mxu1 %v371_v24  ;;  %v321_v36 = vadd.f32 %v1424_v4, %v320_v32  ;;  %v1082_v37 = vpop.f32.mrb[14].mxu1 }
 0x104   :  { %v268_v38 = vadd.f32 %v1066_v35, %v1424_v4  ;;  %v259_v39 = vpop.f32.mrb[15].mxu0  ;;  %1108 = vmatmul.mubr.bf16.gmra.mrb[24].mxu1 %v372_v22  ;;  %v365_v40 = vmax.f32 %v329_v31, 0.0  ;;  %v332_v41 = vadd.f32 %v1082_v37, %v1424_v4  ;;  %v323_v42 = vpop.f32.mrb[15].mxu1  ;;  %v349_v46 = vmax.f32 %v265_v28, 0.0 }
 0x105   :  { %v260_v43 = vadd.f32 %v1424_v4, %v259_v39  ;;  %v363_v44 = vmax.f32 %v321_v36, 0.0  ;;  %v324_v45 = vadd.f32 %v1424_v4, %v323_v42  ;;  %v347_v49 = vmax.f32 %v257_v34, 0.0  ;;  %v1210_v4 = vld [vmem:[%s1681_s5 + $0x30] sm:$0xff]  }
 0x106   :  { %v350_v47 = vmax.f32 %v268_v38, 0.0  ;;  %v366_v48 = vmax.f32 %v332_v41, 0.0  ;;  %1143 = vmatprep.subr.bf16.mxu0 %v1210_v4 }
 0x107   :  { %v348_v50 = vmax.f32 %v260_v43, 0.0  ;;  %v364_v51 = vmax.f32 %v324_v45, 0.0  ;;  %1144 = vmatpush3.bf16.msra.mxu0 %v1210_v4 }
 0x108   :  { %v374_v52 = vpack.c.bf16 %v350_v47, %v349_v46  ;;  %v382_v53 = vpack.c.bf16 %v366_v48, %v365_v40 }
 0x109   :  { %v373_v54 = vpack.c.bf16 %v348_v50, %v347_v49  ;;  %v381_v55 = vpack.c.bf16 %v364_v51, %v363_v44 }
 0x10b   :  { %1111 = vmatprep.mubr.bf16.mxu1 %v373_v54 }
 0x10c   :  { %1112 = vmatmul.mubr.bf16.gmra.mrb[28].mxu1 %v374_v52 }
 0x10d   :  { %1115 = vmatprep.mubr.bf16.mxu1 %v1436_v33  ;;  %v1211_v33 = vld [vmem:[%s1681_s5 + $0x38] sm:$0xff]  }
 0x10e   :  { %1145 = vmatprep.subr.bf16.mxu0 %v1211_v33 }
 0x10f   :  { %1146 = vmatpush3.bf16.msra.mxu0 %v1211_v33 }
 0x114   :  { %1116 = vmatmul.mubr.bf16.gmra.mrb[32].mxu1 %v1434_v30  ;;  %v1479_v30 = vld [vmem:[%s1683_s4] ss:$0 sm:$0xff] }
 0x115   :  { %1119 = vmatprep.mubr.bf16.mxu1 %v1448_v61 }
 0x11c   :  { %1120 = vmatmul.mubr.bf16.gmra.mrb[36].mxu1 %v1446_v58 }
 0x11d   :  { %1123 = vmatprep.mubr.bf16.mxu1 %v379_v26 }
 0x124   :  { %1124 = vmatmul.mubr.bf16.gmra.mrb[40].mxu1 %v380_v23 }
 0x125   :  { %1127 = vmatprep.mubr.bf16.mxu1 %v381_v55 }
 0x12c   :  { %1128 = vmatmul.mubr.bf16.gmra.mrb[44].mxu1 %v382_v53 }
 0x1c7   :  { %v1101_v56 = vpop.f32.mrb[16].mxu1 }
 0x1c8   :  { %v497_v57 = vadd.f32 %v1101_v56, %v1479_v30  ;;  %v488_v58 = vpop.f32.mrb[17].mxu1 }
 0x1c9   :  { %v489_v59 = vadd.f32 %v1479_v30, %v488_v58  ;;  %v1102_v60 = vpop.f32.mrb[18].mxu1 }
 0x1ca   :  { %v500_v61 = vadd.f32 %v1102_v60, %v1479_v30  ;;  %v491_v62 = vpop.f32.mrb[19].mxu1  ;;  %v617_v0 = vmax.f32 %v497_v57, 0.0 }
 0x1cb   :  { %v492_v63 = vadd.f32 %v1479_v30, %v491_v62  ;;  %v615_v2 = vmax.f32 %v489_v59, 0.0 }
 0x1cc   :  { %v618_v1 = vmax.f32 %v500_v61, 0.0 }
 0x1cd   :  { %v616_v3 = vmax.f32 %v492_v63, 0.0 }
 0x1ce   :  { %v648_v5 = vpack.c.bf16 %v618_v1, %v617_v0 }
 0x1cf   :  { %v647_v6 = vpack.c.bf16 %v616_v3, %v615_v2  ;;  %v1105_v7 = vpop.f32.mrb[20].mxu1 }
 0x1d0   :  { %v513_v8 = vadd.f32 %v1105_v7, %v1479_v30  ;;  %v504_v9 = vpop.f32.mrb[21].mxu1 }
 0x1d1   :  { %v505_v10 = vadd.f32 %v1479_v30, %v504_v9  ;;  %v1106_v11 = vpop.f32.mrb[22].mxu1  ;;  %1147 = vmatprep.mubr.bf16.mxu0 %v647_v6 }
 0x1d2   :  { %v516_v12 = vadd.f32 %v1106_v11, %v1479_v30  ;;  %v507_v13 = vpop.f32.mrb[23].mxu1  ;;  %1148 = vmatmul.mubr.bf16.vlgmr.msra.gmra.mrb[16].mxu0 %v648_v5  ;;  %v621_v15 = vmax.f32 %v513_v8, 0.0 }
 0x1d3   :  { %v508_v14 = vadd.f32 %v1479_v30, %v507_v13  ;;  %v619_v17 = vmax.f32 %v505_v10, 0.0 }
 0x1d4   :  { %v622_v16 = vmax.f32 %v516_v12, 0.0 }
 0x1d5   :  { %v620_v18 = vmax.f32 %v508_v14, 0.0 }
 0x1d6   :  { %v650_v19 = vpack.c.bf16 %v622_v16, %v621_v15 }
 0x1d7   :  { %v649_v20 = vpack.c.bf16 %v620_v18, %v619_v17  ;;  %v1109_v21 = vpop.f32.mrb[24].mxu1 }
 0x1d8   :  { %v529_v22 = vadd.f32 %v1109_v21, %v1479_v30  ;;  %v520_v23 = vpop.f32.mrb[25].mxu1 }
 0x1d9   :  { %v521_v24 = vadd.f32 %v1479_v30, %v520_v23  ;;  %v1110_v25 = vpop.f32.mrb[26].mxu1  ;;  %1151 = vmatprep.mubr.bf16.mxu0 %v649_v20 }
 0x1da   :  { %v532_v26 = vadd.f32 %v1110_v25, %v1479_v30  ;;  %v523_v27 = vpop.f32.mrb[27].mxu1  ;;  %1152 = vmatmul.mubr.bf16.gmra.mrb[20].mxu0 %v650_v19  ;;  %v625_v29 = vmax.f32 %v529_v22, 0.0 }
 0x1db   :  { %v524_v28 = vadd.f32 %v1479_v30, %v523_v27  ;;  %v623_v32 = vmax.f32 %v521_v24, 0.0 }
 0x1dc   :  { %v626_v31 = vmax.f32 %v532_v26, 0.0 }
 0x1dd   :  { %v624_v34 = vmax.f32 %v524_v28, 0.0 }
 0x1de   :  { %v652_v35 = vpack.c.bf16 %v626_v31, %v625_v29 }
 0x1df   :  { %v651_v36 = vpack.c.bf16 %v624_v34, %v623_v32  ;;  %v1113_v37 = vpop.f32.mrb[28].mxu1 }
 0x1e0   :  { %v545_v38 = vadd.f32 %v1113_v37, %v1479_v30  ;;  %v536_v39 = vpop.f32.mrb[29].mxu1 }
 0x1e1   :  { %v537_v40 = vadd.f32 %v1479_v30, %v536_v39  ;;  %v1114_v41 = vpop.f32.mrb[30].mxu1  ;;  %1155 = vmatprep.mubr.bf16.mxu0 %v651_v36 }
 0x1e2   :  { %v548_v42 = vadd.f32 %v1114_v41, %v1479_v30  ;;  %v539_v43 = vpop.f32.mrb[31].mxu1  ;;  %1156 = vmatmul.mubr.bf16.gmra.mrb[24].mxu0 %v652_v35  ;;  %v629_v45 = vmax.f32 %v545_v38, 0.0 }
 0x1e3   :  { %v540_v44 = vadd.f32 %v1479_v30, %v539_v43  ;;  %v627_v47 = vmax.f32 %v537_v40, 0.0 }
 0x1e4   :  { %v630_v46 = vmax.f32 %v548_v42, 0.0 }
 0x1e5   :  { %v628_v48 = vmax.f32 %v540_v44, 0.0  ;;  %v1516_v44 = vld [vmem:[%s1684_s6] ss:$0 sm:$0xff] }
 0x1e6   :  { %v654_v49 = vpack.c.bf16 %v630_v46, %v629_v45 }
 0x1e7   :  { %v653_v50 = vpack.c.bf16 %v628_v48, %v627_v47  ;;  %v1117_v51 = vpop.f32.mrb[32].mxu1 }
 0x1e8   :  { %v561_v52 = vadd.f32 %v1117_v51, %v1479_v30  ;;  %v552_v53 = vpop.f32.mrb[33].mxu1 }
 0x1e9   :  { %v553_v54 = vadd.f32 %v1479_v30, %v552_v53  ;;  %v1118_v55 = vpop.f32.mrb[34].mxu1  ;;  %1159 = vmatprep.mubr.bf16.mxu0 %v653_v50 }
 0x1ea   :  { %v564_v4 = vadd.f32 %v1118_v55, %v1479_v30  ;;  %v555_v33 = vpop.f32.mrb[35].mxu1  ;;  %1160 = vmatmul.mubr.bf16.gmra.mrb[28].mxu0 %v654_v49  ;;  %v633_v57 = vmax.f32 %v561_v52, 0.0 }
 0x1eb   :  { %v556_v56 = vadd.f32 %v1479_v30, %v555_v33  ;;  %v631_v59 = vmax.f32 %v553_v54, 0.0 }
 0x1ec   :  { %v634_v58 = vmax.f32 %v564_v4, 0.0 }
 0x1ed   :  { %v632_v60 = vmax.f32 %v556_v56, 0.0 }
 0x1ee   :  { %v656_v61 = vpack.c.bf16 %v634_v58, %v633_v57 }
 0x1ef   :  { %v655_v62 = vpack.c.bf16 %v632_v60, %v631_v59  ;;  %v1121_v63 = vpop.f32.mrb[36].mxu1 }
 0x1f0   :  { %v577_v0 = vadd.f32 %v1121_v63, %v1479_v30  ;;  %v568_v1 = vpop.f32.mrb[37].mxu1 }
 0x1f1   :  { %v569_v2 = vadd.f32 %v1479_v30, %v568_v1  ;;  %v1122_v3 = vpop.f32.mrb[38].mxu1  ;;  %1163 = vmatprep.mubr.bf16.mxu0 %v655_v62 }
 0x1f2   :  { %v580_v5 = vadd.f32 %v1122_v3, %v1479_v30  ;;  %v571_v6 = vpop.f32.mrb[39].mxu1  ;;  %1164 = vmatmul.mubr.bf16.gmra.mrb[32].mxu0 %v656_v61  ;;  %v637_v8 = vmax.f32 %v577_v0, 0.0 }
 0x1f3   :  { %v572_v7 = vadd.f32 %v1479_v30, %v571_v6  ;;  %v635_v10 = vmax.f32 %v569_v2, 0.0 }
 0x1f4   :  { %v638_v9 = vmax.f32 %v580_v5, 0.0 }
 0x1f5   :  { %v636_v11 = vmax.f32 %v572_v7, 0.0 }
 0x1f6   :  { %v658_v12 = vpack.c.bf16 %v638_v9, %v637_v8 }
 0x1f7   :  { %v657_v13 = vpack.c.bf16 %v636_v11, %v635_v10  ;;  %v1125_v14 = vpop.f32.mrb[40].mxu1 }
 0x1f8   :  { %v593_v15 = vadd.f32 %v1125_v14, %v1479_v30  ;;  %v584_v16 = vpop.f32.mrb[41].mxu1 }
 0x1f9   :  { %v585_v17 = vadd.f32 %v1479_v30, %v584_v16  ;;  %v1126_v18 = vpop.f32.mrb[42].mxu1  ;;  %1167 = vmatprep.mubr.bf16.mxu0 %v657_v13 }
 0x1fa   :  { %v596_v19 = vadd.f32 %v1126_v18, %v1479_v30  ;;  %v587_v20 = vpop.f32.mrb[43].mxu1  ;;  %1168 = vmatmul.mubr.bf16.gmra.mrb[36].mxu0 %v658_v12  ;;  %v641_v22 = vmax.f32 %v593_v15, 0.0 }
 0x1fb   :  { %v588_v21 = vadd.f32 %v1479_v30, %v587_v20  ;;  %v639_v24 = vmax.f32 %v585_v17, 0.0 }
 0x1fc   :  { %v642_v23 = vmax.f32 %v596_v19, 0.0 }
 0x1fd   :  { %v640_v25 = vmax.f32 %v588_v21, 0.0 }
 0x1fe   :  { %v660_v26 = vpack.c.bf16 %v642_v23, %v641_v22 }
 0x1ff   :  { %v659_v27 = vpack.c.bf16 %v640_v25, %v639_v24  ;;  %v1129_v28 = vpop.f32.mrb[44].mxu1 }
 0x200   :  { %v609_v29 = vadd.f32 %v1129_v28, %v1479_v30  ;;  %v600_v31 = vpop.f32.mrb[45].mxu1 }
 0x201   :  { %v601_v32 = vadd.f32 %v1479_v30, %v600_v31  ;;  %v1130_v34 = vpop.f32.mrb[46].mxu1  ;;  %1171 = vmatprep.mubr.bf16.mxu0 %v659_v27 }
 0x202   :  { %v612_v35 = vadd.f32 %v1130_v34, %v1479_v30  ;;  %v603_v36 = vpop.f32.mrb[47].mxu1  ;;  %1172 = vmatmul.mubr.bf16.gmra.mrb[40].mxu0 %v660_v26  ;;  %v645_v38 = vmax.f32 %v609_v29, 0.0 }
 0x203   :  { %v604_v37 = vadd.f32 %v1479_v30, %v603_v36  ;;  %v643_v40 = vmax.f32 %v601_v32, 0.0 }
 0x204   :  { %v646_v39 = vmax.f32 %v612_v35, 0.0 }
 0x205   :  { %v644_v41 = vmax.f32 %v604_v37, 0.0 }
 0x206   :  { %v662_v42 = vpack.c.bf16 %v646_v39, %v645_v38 }
 0x207   :  { %v661_v43 = vpack.c.bf16 %v644_v41, %v643_v40 }
 0x209   :  { %1175 = vmatprep.mubr.bf16.mxu0 %v661_v43 }
 0x20a   :  { %1176 = vmatmul.mubr.bf16.gmra.mrb[44].mxu0 %v662_v42 }
 0x2a5   :  { %v1149_v45 = vpop.f32.mrb[16].mxu0 }
 0x2a6   :  { %v777_v46 = vadd.f32 %v1149_v45, %v1516_v44  ;;  %v768_v47 = vpop.f32.mrb[17].mxu0 }
 0x2a7   :  { %v769_v30 = vadd.f32 %v1516_v44, %v768_v47  ;;  %v1150_v48 = vpop.f32.mrb[18].mxu0 }
 0x2a8   :  { %898 = vst.msk [vmem:[%s1685_s7 + $0x10] sm:$0xff] %vm895_vm2, %v777_v46  ;;  %v780_v49 = vadd.f32 %v1150_v48, %v1516_v44  ;;  %v771_v50 = vpop.f32.mrb[19].mxu0 }
 0x2a9   :  { %896 = vst.msk [vmem:[%s1685_s7] sm:$0xff] %vm895_vm2, %v769_v30  ;;  %v772_v51 = vadd.f32 %v1516_v44, %v771_v50 }
 0x2aa   :  { %899 = vst.msk [vmem:[%s1685_s7 + $0x18] sm:$0xff] %vm895_vm2, %v780_v49 }
 0x2ab   :  { %897 = vst.msk [vmem:[%s1685_s7 + $0x8] sm:$0xff] %vm895_vm2, %v772_v51 }
 0x2ad   :  { %v1153_v52 = vpop.f32.mrb[20].mxu0 }
 0x2ae   :  { %v793_v53 = vadd.f32 %v1153_v52, %v1516_v44  ;;  %v784_v54 = vpop.f32.mrb[21].mxu0 }
 0x2af   :  { %v785_v55 = vadd.f32 %v1516_v44, %v784_v54  ;;  %v1154_v4 = vpop.f32.mrb[22].mxu0 }
 0x2b0   :  { %902 = vst.msk [vmem:[%s1685_s7 + $0x30] sm:$0xff] %vm895_vm2, %v793_v53  ;;  %v796_v33 = vadd.f32 %v1154_v4, %v1516_v44  ;;  %v787_v56 = vpop.f32.mrb[23].mxu0 }
 0x2b1   :  { %900 = vst.msk [vmem:[%s1685_s7 + $0x20] sm:$0xff] %vm895_vm2, %v785_v55  ;;  %v788_v57 = vadd.f32 %v1516_v44, %v787_v56 }
 0x2b2   :  { %903 = vst.msk [vmem:[%s1685_s7 + $0x38] sm:$0xff] %vm895_vm2, %v796_v33 }
 0x2b3   :  { %901 = vst.msk [vmem:[%s1685_s7 + $0x28] sm:$0xff] %vm895_vm2, %v788_v57 }
 0x2b5   :  { %v1157_v58 = vpop.f32.mrb[24].mxu0 }
 0x2b6   :  { %v809_v59 = vadd.f32 %v1157_v58, %v1516_v44  ;;  %v800_v60 = vpop.f32.mrb[25].mxu0 }
 0x2b7   :  { %v801_v61 = vadd.f32 %v1516_v44, %v800_v60  ;;  %v1158_v62 = vpop.f32.mrb[26].mxu0 }
 0x2b8   :  { %906 = vst.msk [vmem:[%s1685_s7 + $0x50] sm:$0xff] %vm895_vm2, %v809_v59  ;;  %v812_v63 = vadd.f32 %v1158_v62, %v1516_v44  ;;  %v803_v0 = vpop.f32.mrb[27].mxu0 }
 0x2b9   :  { %904 = vst.msk [vmem:[%s1685_s7 + $0x40] sm:$0xff] %vm895_vm2, %v801_v61  ;;  %v804_v1 = vadd.f32 %v1516_v44, %v803_v0 }
 0x2ba   :  { %907 = vst.msk [vmem:[%s1685_s7 + $0x58] sm:$0xff] %vm895_vm2, %v812_v63 }
 0x2bb   :  { %905 = vst.msk [vmem:[%s1685_s7 + $0x48] sm:$0xff] %vm895_vm2, %v804_v1 }
 0x2bd   :  { %v1161_v2 = vpop.f32.mrb[28].mxu0 }
 0x2be   :  { %v825_v3 = vadd.f32 %v1161_v2, %v1516_v44  ;;  %v816_v5 = vpop.f32.mrb[29].mxu0 }
 0x2bf   :  { %v817_v6 = vadd.f32 %v1516_v44, %v816_v5  ;;  %v1162_v7 = vpop.f32.mrb[30].mxu0 }
 0x2c0   :  { %910 = vst.msk [vmem:[%s1685_s7 + $0x70] sm:$0xff] %vm895_vm2, %v825_v3  ;;  %v828_v8 = vadd.f32 %v1162_v7, %v1516_v44  ;;  %v819_v9 = vpop.f32.mrb[31].mxu0 }
 0x2c1   :  { %908 = vst.msk [vmem:[%s1685_s7 + $0x60] sm:$0xff] %vm895_vm2, %v817_v6  ;;  %v820_v10 = vadd.f32 %v1516_v44, %v819_v9 }
 0x2c2   :  { %911 = vst.msk [vmem:[%s1685_s7 + $0x78] sm:$0xff] %vm895_vm2, %v828_v8 }
 0x2c3   :  { %909 = vst.msk [vmem:[%s1685_s7 + $0x68] sm:$0xff] %vm895_vm2, %v820_v10 }
 0x2c5   :  { %v1165_v11 = vpop.f32.mrb[32].mxu0 }
 0x2c6   :  { %v841_v12 = vadd.f32 %v1165_v11, %v1516_v44  ;;  %v832_v13 = vpop.f32.mrb[33].mxu0 }
 0x2c7   :  { %v833_v14 = vadd.f32 %v1516_v44, %v832_v13  ;;  %v1166_v15 = vpop.f32.mrb[34].mxu0 }
 0x2c8   :  { %914 = vst.msk [vmem:[%s1685_s7 + $0x90] sm:$0xff] %vm895_vm2, %v841_v12  ;;  %v844_v16 = vadd.f32 %v1166_v15, %v1516_v44  ;;  %v835_v17 = vpop.f32.mrb[35].mxu0 }
 0x2c9   :  { %912 = vst.msk [vmem:[%s1685_s7 + $0x80] sm:$0xff] %vm895_vm2, %v833_v14  ;;  %v836_v18 = vadd.f32 %v1516_v44, %v835_v17 }
 0x2ca   :  { %915 = vst.msk [vmem:[%s1685_s7 + $0x98] sm:$0xff] %vm895_vm2, %v844_v16 }
 0x2cb   :  { %913 = vst.msk [vmem:[%s1685_s7 + $0x88] sm:$0xff] %vm895_vm2, %v836_v18 }
 0x2cd   :  { %v1169_v19 = vpop.f32.mrb[36].mxu0 }
 0x2ce   :  { %v857_v20 = vadd.f32 %v1169_v19, %v1516_v44  ;;  %v848_v21 = vpop.f32.mrb[37].mxu0 }
 0x2cf   :  { %v849_v22 = vadd.f32 %v1516_v44, %v848_v21  ;;  %v1170_v23 = vpop.f32.mrb[38].mxu0 }
 0x2d0   :  { %918 = vst.msk [vmem:[%s1685_s7 + $0xb0] sm:$0xff] %vm895_vm2, %v857_v20  ;;  %v860_v24 = vadd.f32 %v1170_v23, %v1516_v44  ;;  %v851_v25 = vpop.f32.mrb[39].mxu0 }
 0x2d1   :  { %916 = vst.msk [vmem:[%s1685_s7 + $0xa0] sm:$0xff] %vm895_vm2, %v849_v22  ;;  %v852_v26 = vadd.f32 %v1516_v44, %v851_v25 }
 0x2d2   :  { %919 = vst.msk [vmem:[%s1685_s7 + $0xb8] sm:$0xff] %vm895_vm2, %v860_v24 }
 0x2d3   :  { %917 = vst.msk [vmem:[%s1685_s7 + $0xa8] sm:$0xff] %vm895_vm2, %v852_v26 }
 0x2d5   :  { %v1173_v27 = vpop.f32.mrb[40].mxu0 }
 0x2d6   :  { %v873_v28 = vadd.f32 %v1173_v27, %v1516_v44  ;;  %v864_v29 = vpop.f32.mrb[41].mxu0 }
 0x2d7   :  { %v865_v31 = vadd.f32 %v1516_v44, %v864_v29  ;;  %v1174_v32 = vpop.f32.mrb[42].mxu0 }
 0x2d8   :  { %922 = vst.msk [vmem:[%s1685_s7 + $0xd0] sm:$0xff] %vm895_vm2, %v873_v28  ;;  %v876_v34 = vadd.f32 %v1174_v32, %v1516_v44  ;;  %v867_v35 = vpop.f32.mrb[43].mxu0 }
 0x2d9   :  { %920 = vst.msk [vmem:[%s1685_s7 + $0xc0] sm:$0xff] %vm895_vm2, %v865_v31  ;;  %v868_v36 = vadd.f32 %v1516_v44, %v867_v35 }
 0x2da   :  { %923 = vst.msk [vmem:[%s1685_s7 + $0xd8] sm:$0xff] %vm895_vm2, %v876_v34 }
 0x2db   :  { %921 = vst.msk [vmem:[%s1685_s7 + $0xc8] sm:$0xff] %vm895_vm2, %v868_v36 }
 0x2dd   :  { %v1177_v37 = vpop.f32.mrb[44].mxu0 }
 0x2de   :  { %v889_v38 = vadd.f32 %v1177_v37, %v1516_v44  ;;  %v880_v39 = vpop.f32.mrb[45].mxu0 }
 0x2df   :  { %v881_v40 = vadd.f32 %v1516_v44, %v880_v39  ;;  %v1178_v41 = vpop.f32.mrb[46].mxu0 }
 0x2e0   :  { %926 = vst.msk [vmem:[%s1685_s7 + $0xf0] sm:$0xff] %vm895_vm2, %v889_v38  ;;  %v892_v42 = vadd.f32 %v1178_v41, %v1516_v44  ;;  %v883_v43 = vpop.f32.mrb[47].mxu0 }
 0x2e1   :  { %924 = vst.msk [vmem:[%s1685_s7 + $0xe0] sm:$0xff] %vm895_vm2, %v881_v40  ;;  %v884_v45 = vadd.f32 %v1516_v44, %v883_v43 }
 0x2e2   :  { %927 = vst.msk [vmem:[%s1685_s7 + $0xf8] sm:$0xff] %vm895_vm2, %v892_v42 }
 0x2e3   :  { %925 = vst.msk [vmem:[%s1685_s7 + $0xe8] sm:$0xff] %vm895_vm2, %v884_v45 }

</bundles_post_ra>
